<compile_context>
chip_gen: v7x
topology: tpu7x:2x2x1
jax: 0.10.0
libtpu: 0.0.40
codegen_flags: <defaults>
</compile_context>

<pallas_src>
import jax
import jax.numpy as jnp
from jax.experimental import pallas as pl
from jax.experimental.pallas import tpu as pltpu


# ----------------------------- kernels --------------------------------------

def _rope_kernel_roll(x_ref, cos_ref, sin_ref, o_ref):
    # x_ref: (T, TS, D); cos_ref / sin_ref: (TS, D) sign-folded tables.
    x = x_ref[...]
    half = x.shape[-1] // 2
    x_swap = pltpu.roll(x, shift=half, axis=x.ndim - 1)          # [x2, x1]
    o_ref[...] = (x * cos_ref[...] + x_swap * sin_ref[...]).astype(o_ref.dtype)


def _rope_kernel_slice(x_ref, cos_ref, sin_ref, o_ref):
    # Fallback when head_dim is not a multiple of 128 (lane roll on a padded
    # lane dim); loads/stores are still full width of the (full) head dim.
    x = x_ref[...]
    half = x.shape[-1] // 2
    x_swap = jnp.concatenate([x[..., half:], x[..., :half]], axis=-1)
    o_ref[...] = (x * cos_ref[...] + x_swap * sin_ref[...]).astype(o_ref.dtype)


# --------------------------- tiling helpers ----------------------------------

def _divisors(n):
    return [d for d in range(1, n + 1) if n % d == 0]


def _pick_tiles(num_heads, seq, head_dim, itemsize, target_bytes=2 << 20):
    """Pick (heads-per-block T, seq-per-block TS) aiming at ~target_bytes/block."""
    row_bytes = head_dim * itemsize
    # Seq tile: full S if a single head's slab fits, else a multiple-of-8 divisor.
    if seq * row_bytes <= target_bytes:
        ts = seq
    else:
        cands = [d for d in _divisors(seq)
                 if d % 8 == 0 and d * row_bytes <= target_bytes]
        ts = max(cands) if cands else seq
    block_bytes = ts * row_bytes
    fitting = [d for d in _divisors(num_heads)
               if d * block_bytes <= target_bytes] or [1]
    # Prefer an even number of head blocks (v7x: 2 TensorCores).
    even = [d for d in fitting if (num_heads // d) % 2 == 0]
    t = max(even) if even else max(fitting)
    if num_heads >= 2 and num_heads // t < 2:
        t = max(d for d in _divisors(num_heads) if num_heads // d >= 2)
    return t, ts


# ----------------------------- wrapper ---------------------------------------

def _rope_apply_bhsd(x, cos_tab, sin_tab):
    """x: (B, H, S, D); cos_tab / sin_tab: (S, D) sign-folded tables."""
    B, H, S, D = x.shape
    dtype = x.dtype
    nh = B * H
    x_flat = x.reshape(nh, S, D)

    T, TS = _pick_tiles(nh, S, D, jnp.dtype(dtype).itemsize)
    grid = (S // TS, nh // T)   # seq outer, heads inner -> table block resident

    kernel = _rope_kernel_roll if D % 128 == 0 else _rope_kernel_slice

    out_flat = pl.pallas_call(
        kernel,
        out_shape=jax.ShapeDtypeStruct((nh, S, D), dtype),
        grid=grid,
        in_specs=[
            pl.BlockSpec((T, TS, D), lambda si, hi: (hi, si, 0)),
            pl.BlockSpec((TS, D), lambda si, hi: (si, 0)),
            pl.BlockSpec((TS, D), lambda si, hi: (si, 0)),
        ],
        out_specs=pl.BlockSpec((T, TS, D), lambda si, hi: (hi, si, 0)),
        compiler_params=pltpu.CompilerParams(
            dimension_semantics=("parallel", "parallel"),
            vmem_limit_bytes=32 * 1024 * 1024,
        ),
    )(x_flat, cos_tab.astype(dtype), sin_tab.astype(dtype))

    return out_flat.reshape(B, H, S, D)


def rope_forward(x: jax.Array, seq_len: int, dim: int, theta: float = 10000.0):
    """Equivalent of RoPEEmbedding(dim, theta=theta).forward(x, seq_len)."""
    if x.ndim != 4:
        raise ValueError(f"Expected 4D tensor, got {x.ndim}D")
    if dim % 2 != 0:
        raise ValueError(f"RoPE dimension must be even, got {dim}")
    head_dim = x.shape[-1]
    if head_dim > dim:
        raise ValueError("head_dim > rope dim is not supported by the module")

    # Table glue (done once, fp32 for accuracy, cast to x.dtype at the call).
    inv_freq = 1.0 / (theta ** (jnp.arange(0, dim, 2, dtype=jnp.float32) / dim))
    seq_idx = jnp.arange(seq_len, dtype=jnp.float32)
    freqs = jnp.outer(seq_idx, inv_freq)                       # (seq_len, dim//2)
    cos = jnp.concatenate([jnp.cos(freqs), jnp.cos(freqs)], axis=-1)
    sin = jnp.concatenate([jnp.sin(freqs), jnp.sin(freqs)], axis=-1)

    # Mimic the module's seq-dim detection.
    seq_dim = 1 if x.shape[1] == seq_len else 2
    s_x = x.shape[seq_dim]

    cos = cos[:s_x, :head_dim]                                 # = [cos1, cos2]
    sin = sin[:s_x, :head_dim]
    half = head_dim // 2
    cos_tab = cos
    sin_tab = jnp.concatenate([-sin[:, :half], sin[:, half:]], axis=-1)  # [-sin1, sin2]

    if seq_dim == 1:
        # (B, S, H, D) layout: run the (B, H, S, D) kernel around transposes.
        # TODO(synk): tile the seq_dim=1 layout natively to avoid the transposes.
        out = _rope_apply_bhsd(jnp.swapaxes(x, 1, 2), cos_tab, sin_tab)
        return jnp.swapaxes(out, 1, 2)
    return _rope_apply_bhsd(x, cos_tab, sin_tab)


# ----------------------------- reference -------------------------------------

def _rope_reference(x, seq_len, dim, theta=10000.0):
    """Pure-JAX mirror of the PyTorch module."""
    inv_freq = 1.0 / (theta ** (jnp.arange(0, dim, 2, dtype=jnp.float32) / dim))
    seq_idx = jnp.arange(seq_len, dtype=x.dtype)
    freqs = jnp.outer(seq_idx, inv_freq).astype(x.dtype)
    cos = jnp.concatenate([jnp.cos(freqs), jnp.cos(freqs)], axis=-1)
    sin = jnp.concatenate([jnp.sin(freqs), jnp.sin(freqs)], axis=-1)
    head_dim = x.shape[-1]
    seq_dim = 1 if x.shape[1] == cos.shape[0] else 2
    shape = [1, 1, 1, 1]
    shape[seq_dim] = x.shape[seq_dim]
    shape[-1] = head_dim
    cos = cos[: x.shape[seq_dim], :head_dim].reshape(shape)
    sin = sin[: x.shape[seq_dim], :head_dim].reshape(shape)
    x1, x2 = x[..., : head_dim // 2], x[..., head_dim // 2:]
    c1, c2 = cos[..., : head_dim // 2], cos[..., head_dim // 2:]
    s1, s2 = sin[..., : head_dim // 2], sin[..., head_dim // 2:]
    return jnp.concatenate([x1 * c1 - x2 * s1, x1 * s2 + x2 * c2], axis=-1)


if __name__ == "__main__":
    # heads (4) != seq (64) so the module's detection picks the seq_dim=2 branch;
    # head_dim=128 exercises the lane-dense roll path.
    B, H, S, D = 2, 4, 64, 128
    key = jax.random.PRNGKey(0)
    x = jax.random.normal(key, (B, H, S, D), dtype=jnp.float32)

    out = jax.block_until_ready(rope_forward(x, seq_len=S, dim=D, theta=10000.0))

    ref = _rope_reference(x, S, D)
    assert out.shape == x.shape and out.dtype == x.dtype
    assert jnp.allclose(out, ref, atol=1e-5, rtol=1e-5)

    print("KERNEL_OK")
</pallas_src>

<mosaic_0001>
module attributes {stable_mosaic.version = 11 : i64} {
  func.func @_rope_kernel_roll(%arg0: i32, %arg1: i32, %arg2: memref<4x64x128xf32, #tpu.memory_space<vmem>>, %arg3: memref<64x128xf32, #tpu.memory_space<vmem>>, %arg4: memref<64x128xf32, #tpu.memory_space<vmem>>, %arg5: memref<4x64x128xf32, #tpu.memory_space<vmem>>) attributes {dimension_semantics = [#tpu.dimension_semantics<parallel>, #tpu.dimension_semantics<parallel>], iteration_bounds = array<i64: 1, 2>, scalar_prefetch = 0 : i64, scratch_operands = 0 : i64, tpu.core_type = #tpu.core_type<tc>, window_params = [{transform_indices = @transform_0, window_bounds = array<i64: 4, 64, 128>}, {transform_indices = @transform_1, window_bounds = array<i64: 64, 128>}, {transform_indices = @transform_2, window_bounds = array<i64: 64, 128>}, {transform_indices = @transform_3, window_bounds = array<i64: 4, 64, 128>}]} {
    %c0 = arith.constant 0 : index
    %c0_0 = arith.constant 0 : index
    %c0_1 = arith.constant 0 : index
    %0 = vector.load %arg2[%c0, %c0_0, %c0_1] : memref<4x64x128xf32, #tpu.memory_space<vmem>>, vector<4x64x128xf32>
    %c64_i32 = arith.constant 64 : i32
    %1 = tpu.dynamic_rotate %0 by %c64_i32 dim 2 : vector<4x64x128xf32>, i32 -> vector<4x64x128xf32>
    %c0_2 = arith.constant 0 : index
    %c0_3 = arith.constant 0 : index
    %2 = vector.load %arg3[%c0_2, %c0_3] : memref<64x128xf32, #tpu.memory_space<vmem>>, vector<64x128xf32>
    %3 = vector.shape_cast %2 : vector<64x128xf32> to vector<1x64x128xf32>
    %4 = vector.broadcast %3 : vector<1x64x128xf32> to vector<4x64x128xf32>
    %5 = arith.mulf %0, %4 : vector<4x64x128xf32>
    %c0_4 = arith.constant 0 : index
    %c0_5 = arith.constant 0 : index
    %6 = vector.load %arg4[%c0_4, %c0_5] : memref<64x128xf32, #tpu.memory_space<vmem>>, vector<64x128xf32>
    %7 = vector.shape_cast %6 : vector<64x128xf32> to vector<1x64x128xf32>
    %8 = vector.broadcast %7 : vector<1x64x128xf32> to vector<4x64x128xf32>
    %9 = arith.mulf %1, %8 : vector<4x64x128xf32>
    %10 = arith.addf %5, %9 : vector<4x64x128xf32>
    %c0_6 = arith.constant 0 : index
    %c0_7 = arith.constant 0 : index
    %c0_8 = arith.constant 0 : index
    %11 = vector.load %arg5[%c0_6, %c0_7, %c0_8] : memref<4x64x128xf32, #tpu.memory_space<vmem>>, vector<4x64x128xf32>
    tpu.vector_store %arg5[%c0_6, %c0_7, %c0_8], %10 {strides = array<i32>} : memref<4x64x128xf32, #tpu.memory_space<vmem>>, vector<4x64x128xf32>,
    return
  }
  func.func @transform_0(%arg0: i32, %arg1: i32) -> (i32, i32, i32) {
    %c0_i32 = arith.constant 0 : i32
    %c0_i32_0 = arith.constant 0 : i32
    return %arg1, %arg0, %c0_i32 : i32, i32, i32
  }
  func.func @transform_1(%arg0: i32, %arg1: i32) -> (i32, i32) {
    %c0_i32 = arith.constant 0 : i32
    %c0_i32_0 = arith.constant 0 : i32
    return %arg0, %c0_i32 : i32, i32
  }
  func.func @transform_2(%arg0: i32, %arg1: i32) -> (i32, i32) {
    %c0_i32 = arith.constant 0 : i32
    %c0_i32_0 = arith.constant 0 : i32
    return %arg0, %c0_i32 : i32, i32
  }
  func.func @transform_3(%arg0: i32, %arg1: i32) -> (i32, i32, i32) {
    %c0_i32 = arith.constant 0 : i32
    %c0_i32_0 = arith.constant 0 : i32
    return %arg1, %arg0, %c0_i32 : i32, i32, i32
  }
}

</mosaic_0001>

<bundles_post_ra>
// kernel: tpu_custom_call.1
= control target key start
LH: loop header
LB: loop body
LE: loop exit
PB: predicated region body
PF: predicated region fallthrough
CT: control target
= control target key end

     0   :  { %8 = vsyncpa [#allocation3], 0  ;;  %s1535_s0 = inlined_call_operand.hbm [shape: f32[8,64,128], index: 0, kind: input, shape index: {}]   ;;  %s1536_s1 = inlined_call_operand.hbm [shape: f32[64,128], index: 1, kind: input, shape index: {}]   ;;  %s1537_s2 = inlined_call_operand.hbm [shape: f32[64,128], index: 2, kind: input, shape index: {}]   ;;  %s1538_s3 = inlined_call_operand.hbm [shape: f32[8,64,128], index: 3, kind: output, shape index: {}]  }
   0x1   :  { %10 = vsyncpa [#allocation3 + $0x1], 0 }
   0x2   :  { %11 = vsyncpa [#allocation6], 0 }
   0x3   :  { %12 = vsyncpa [#allocation4], 0 }
   0x4   :  { %14 = vsyncpa [#allocation4 + $0x1], 0  ;;  %s942_s12 = smov 0   ;;  %s944_s13 = smov 0  }
   0x5   :  { %s946_s14 = smov 0   ;;  %s948_s15 = smov 0  }
   0x6   :  { %s950_s16 = smov 0   ;;  %s952_s17 = smov 0  }
   0x7 LB: > { %s626_s18 = sadd.s32 4294967295, %s911_s17   ;;  %s627_s19 = sadd.s32 4294967294, %s911_s17   ;;  %s911_s17 = sphi %s952_s17, %s20_s17   ;;  %s907_s16 = sphi %s950_s16, %s1560_s16   ;;  %s903_s15 = sphi %s948_s15, %s1559_s15   ;;  %s899_s14 = sphi %s946_s14, %s1558_s14   ;;  %s895_s13 = sphi %s944_s13, %s1557_s13   ;;  %s891_s12 = sphi %s942_s12, %s1556_s12  }
   0x8   : > { %p54_p0 = scmp.ne.s32.totalorder %s895_s13, %s891_s12  ;;  %p976_p1 = scmp.eq.s32.totalorder %s626_s18, 0 }
   0x9   : > { %p980_p2 = scmp.eq.s32.totalorder %s626_s18, 1  ;;  %p138_p3 = scmp.eq.s32.totalorder %s627_s19, 1 }
   0xa   : > { %s1543_s20 = scalar_select %p976_p1, 1, 0 }
   0xb   : > { %p986_p4 = por %p976_p1, %p54_p0  ;;  %p628_p5 = scmp.ge.s32.totalorder %s911_s17, 1 }
   0xc   : > { %p991_p6 = por %p138_p3, %p54_p0  ;;  %p145_p7 = scmp.lt.s32.totalorder %s911_s17, 3 }
   0xd   : > { %s1545_s22 = scalar_select %p986_p4, 1, 0 }
   0xe   : > { %s1546_s23 = scalar_select %p991_p6, 1, 0 }
   0xf   : > { %p996_p8 = pnand %p628_p5, %p145_p7  ;;  %s913_s25 = smov [#allocation5]  }
  0x10   : > { %s160_s26 = sshll.u32 %s913_s25, 4  ;;  %s914_s28 = smov [#allocation7]   ;;  %s1000_s26 = int_to_ptr.vmem [resolvable:$true] %s160_s26 }
  0x11   : > { %p663_p9 = pneg %p996_p8  ;;  %s176_s29 = sshll.u32 %s914_s28, 4  ;;  %s1011_s29 = int_to_ptr.vmem [resolvable:$true] %s176_s29 }
  0x12   : > { %s739_s5 = scalar_lea.hbm %s1536_s1, 1024 }
  0x13   : > { %p1007_p11 = pnand %p663_p9, %p976_p1  ;;  %p740_p12 = scmp.ne.s32.totalorder %s1536_s1, %s739_s5 }
  0x14   : > { %p746_p5 = scmp.lt.u32.totalorder %s739_s5, %s1536_s1 }
  0x15   : > { %p741_p13 = pneg %p1007_p11 }
  0x17   : > { %p742_p0 = pnand %p741_p13, %p740_p12 }
  0x19   : > { %p743_p3 = pneg %p742_p0 }
  0x1b   : > { %p748_p7 = pnand %p746_p5, %p743_p3 }
  0x1d   : > { %751 = shalt.err (!%p748_p7)
}
  0x1e   : > { %s752_s10 = scalar_lea.vmem %s1000_s26, 1024  ;;  %p760_p1 = scmp.lt.s32.totalorder %s1000_s26, %s1000_s26 }
  0x1f   : > { %p753_p9 = scmp.ne.s32.totalorder %s1000_s26, %s752_s10  ;;  %p761_p12 = scmp.lt.s32.totalorder %s752_s10, %s752_s10 }
  0x21   : > { %p755_p10 = pnand %p753_p9, %p741_p13  ;;  %p762_p0 = por %p761_p12, %p760_p1 }
  0x23   : > { %p756_p6 = pneg %p755_p10 }
  0x25   : > { %p763_p4 = pnand %p762_p0, %p756_p6 }
  0x27   : > { %766 = shalt.err (!%p763_p4)
}
  0x28   : > { %s915_s11 = smov 128   ;;  %s916_s18 = smov 8  }
  0x29   : > { %666 = dma.hbm_to_vmem [thread:$0]  (!%p1007_p11), %s1536_s1, 1024, %s1000_s26, [#allocation6], %s915_s11, %s915_s11, %s916_s18  }
  0x2a   : > { %s767_s4 = scalar_lea.hbm %s1537_s2, 1024 }
  0x2b   : > { %p768_p1 = scmp.ne.s32.totalorder %s1537_s2, %s767_s4  ;;  %p774_p10 = scmp.lt.u32.totalorder %s767_s4, %s1537_s2 }
  0x2d   : > { %p770_p4 = pnand %p768_p1, %p741_p13 }
  0x2f   : > { %p771_p6 = pneg %p770_p4 }
  0x31   : > { %p776_p3 = pnand %p774_p10, %p771_p6 }
  0x33   : > { %779 = shalt.err (!%p776_p3)
}
  0x34   : > { %s780_s26 = scalar_lea.vmem %s1011_s29, 1024  ;;  %p788_p12 = scmp.lt.s32.totalorder %s1011_s29, %s1011_s29 }
  0x35   : > { %p781_p5 = scmp.ne.s32.totalorder %s1011_s29, %s780_s26  ;;  %p789_p0 = scmp.lt.s32.totalorder %s780_s26, %s780_s26 }
  0x37   : > { %p783_p7 = pnand %p781_p5, %p741_p13  ;;  %p790_p1 = por %p789_p0, %p788_p12 }
  0x39   : > { %p784_p9 = pneg %p783_p7 }
  0x3b   : > { %p791_p4 = pnand %p790_p1, %p784_p9 }
  0x3d   : > { %794 = shalt.err (!%p791_p4)
}
  0x3e   : > { %669 = dma.hbm_to_vmem [thread:$0]  (!%p1007_p11), %s1537_s2, 1024, %s1011_s29, [#allocation6], %s915_s11, %s915_s11, %s916_s18  }
  0x3f   : > { %s29_s27 = sadd.s32 1, %s907_s16  ;;  %s41_s19 = sadd.s32 1, %s899_s14 }
  0x40   : > { %p30_p13 = scmp.ge.s32.totalorder %s29_s27, 2  ;;  %p48_p6 = scmp.ne.s32.totalorder %s899_s14, %s895_s13 }
  0x41   : > { %p49_p10 = scmp.eq.s32.totalorder %s911_s17, 0  ;;  %p680_p3 = scmp.lt.s32.totalorder %s911_s17, 2 }
  0x42   : > { %s1562_s27 = smov (%p30_p13, %s29_s27), 0  ;;  %p1081_p7 = por %p980_p2, %p48_p6 }
  0x43   : > { %p50_p5 = por %p49_p10, %p48_p6  ;;  %s36_s28 = ssub.s32 %s907_s16, %s1562_s27 }
  0x44   : > { %s1549_s25 = scalar_select %p1081_p7, 1, 0 }
  0x45   : > { %s190_s30 = sand.u32 1, %s899_s14   ;;  %p39_p9 = scmp.eq.s32.totalorder %s36_s28, 0 }
  0x46   : > { %s632_s29 = sshll.u32 %s190_s30, 8  ;;  %s648_s4 = sshll.u32 %s907_s16, 12 }
  0x47   : > { %s1090_s5 = scalar_select %p39_p9, %s899_s14, %s41_s19  }
  0x48   : > { %s1095_s8 = scalar_lea.hbm %s1535_s0, %s648_s4  ;;  %s194_s21 = scalar_lea.vmem [#allocation2], %s632_s29 }
  0x49   : > { %s204_s26 = sshll.u32 %s194_s21, 4  ;;  %p1099_p2 = pnand %p680_p3, %p50_p5  ;;  %s1103_s26 = int_to_ptr.vmem [resolvable:$true] %s204_s26 }
  0x4a   : > { %s1105_s10 = scalar_lea.sflag [#allocation3], %s190_s30  ;;  %s795_s19 = scalar_lea.hbm %s1095_s8, 4096 }
  0x4b   : > { %p796_p11 = scmp.ne.s32.totalorder %s1095_s8, %s795_s19  ;;  %p797_p12 = pneg %p1099_p2 }
  0x4c   : > { %s800_s4 = scalar_lea.hbm %s1535_s0, 8192  ;;  %p801_p4 = scmp.lt.u32.totalorder %s1095_s8, %s1535_s0 }
  0x4d   : > { %p798_p0 = pnand %p797_p12, %p796_p11  ;;  %p802_p13 = scmp.lt.u32.totalorder %s800_s4, %s795_s19 }
  0x4e   : > { %p804_p10 = scmp.lt.u32.totalorder %s795_s19, %s1095_s8 }
  0x4f   : > { %p799_p1 = pneg %p798_p0  ;;  %p803_p6 = por %p802_p13, %p801_p4 }
  0x51   : > { %p805_p3 = por %p804_p10, %p803_p6 }
  0x53   : > { %p806_p5 = pnand %p805_p3, %p799_p1 }
  0x55   : > { %809 = shalt.err (!%p806_p5)
}
  0x56   : > { %s810_s30 = scalar_lea.vmem %s1103_s26, 4096  ;;  %s917_s21 = smov [#allocation2]  }
  0x57   : > { %p811_p9 = scmp.ne.s32.totalorder %s1103_s26, %s810_s30  ;;  %s815_s28 = sshll.u32 %s917_s21, 4  ;;  %s816_s28 = int_to_ptr.vmem [resolvable:$false] %s815_s28 }
  0x58   : > { %s817_s29 = scalar_lea.vmem %s816_s28, 8192  ;;  %p818_p7 = scmp.lt.s32.totalorder %s1103_s26, %s816_s28 }
  0x59   : > { %p813_p11 = pnand %p811_p9, %p797_p12  ;;  %p819_p4 = scmp.lt.s32.totalorder %s817_s29, %s810_s30 }
  0x5b   : > { %p814_p0 = pneg %p813_p11  ;;  %p820_p13 = por %p819_p4, %p818_p7 }
  0x5d   : > { %p821_p6 = pnand %p820_p13, %p814_p0 }
  0x5f   : > { %824 = shalt.err (!%p821_p6)
}
  0x60   : > { %673 = dma.hbm_to_vmem [thread:$0]  (!%p1099_p2), %s1095_s8, 4096, %s1103_s26, %s1105_s10, %s915_s11, %s915_s11, %s916_s18  }
  0x61   : > { %216 = sbr.rel (%p996_p8) target bundleno = 303 (0x12f), region = 32  ;;  %s1139_s19 = sand.u32 (!%p996_p8), 1, %s895_s13  }
  0x62   : > { %s637_s4 = sshll.u32 (!%p996_p8), %s1139_s19, 8  ;;  %s219_s6 = scalar_lea.sflag (!%p996_p8), [#allocation3], %s1139_s19 }
  0x63   : > { %s1145_s9 = scalar_lea.vmem (!%p996_p8), [#allocation2], %s637_s4  ;;  %p1551_p7 = scmp.ne.s32.totalorder (!%p996_p8), %s1545_s22, 0 }
  0x68   : > { %878 = dma.done.wait (%p1551_p7), %s219_s6, 4096  }
  0x69   : > { %880 = vsyncadd (%p1551_p7), %s219_s6, 4294963200  ;;  %p1552_p2 = scmp.ne.s32.totalorder %s1543_s20, 0 }
  0x6b   : > { %882 = dma.done.wait (%p1552_p2), [#allocation6], 2048  }
  0x6c   : > { %884 = vsyncadd (%p1552_p2), [#allocation6], 4294965248  ;;  %v1156_v0 = vld [vmem:[%s1145_s9 + $0x10] sm:$0xff]  ;;  %v1159_v1 = vld [vmem:[%s1145_s9] sm:$0xff]  ;;  %s918_s22 = smov 64   ;;  %s1347_s20 = scalar_lea.vmem [#allocation8], %s637_s4 }
  0x6d   : > { %295 = vrot.lane.b32.xlu1 %v1156_v0, %s918_s22  ;;  %291 = vrot.lane.b32.xlu0 %v1159_v1, %s918_s22  ;;  %v1166_v2 = vld [vmem:[%s1145_s9 + $0x18] sm:$0xff]  ;;  %v1169_v3 = vld [vmem:[%s1145_s9 + $0x8] sm:$0xff]  ;;  %v1315_v32 = vld [vmem:[#allocation5 + $0x10] sm:$0xff]  ;;  %s650_s24 = sshll.u32 %s903_s15, 12  ;;  %s516_s11 = sshll.u32 %s1347_s20, 4  ;;  %s1484_s11 = int_to_ptr.vmem [resolvable:$true] %s516_s11 }
  0x6e   : > { %v1176_v4 = vld [vmem:[%s1145_s9 + $0x28] sm:$0xff]  ;;  %v1179_v5 = vld [vmem:[%s1145_s9 + $0x20] sm:$0xff]  ;;  %v1186_v6 = vld [vmem:[%s1145_s9 + $0x38] sm:$0xff]  ;;  %v365_v36 = vmul.f32 %v1315_v32, %v1156_v0  ;;  %s1482_s26 = scalar_lea.hbm %s1538_s3, %s650_s24  ;;  %s500_s15 = scalar_lea.sflag [#allocation4], %s1139_s19 }
  0x6f   : > { %v1189_v7 = vld [vmem:[%s1145_s9 + $0x30] sm:$0xff]  ;;  %v1196_v8 = vld [vmem:[%s1145_s9 + $0x48] sm:$0xff]  ;;  %v1199_v9 = vld [vmem:[%s1145_s9 + $0x40] sm:$0xff]  ;;  %s825_s10 = scalar_lea.vmem %s1484_s11, 4096  ;;  %p1553_p12 = scmp.ne.s32.totalorder %s1549_s25, 0 }
  0x70   : > { %v1206_v10 = vld [vmem:[%s1145_s9 + $0x58] sm:$0xff]  ;;  %v1209_v11 = vld [vmem:[%s1145_s9 + $0x50] sm:$0xff]  ;;  %v1216_v12 = vld [vmem:[%s1145_s9 + $0x68] sm:$0xff]  ;;  %p826_p8 = scmp.ne.s32.totalorder %s1484_s11, %s825_s10  ;;  %s919_s7 = smov [#allocation8]  }
  0x71   : > { %297 = vrot.lane.b32.xlu1 %v1166_v2, %s918_s22  ;;  %293 = vrot.lane.b32.xlu0 %v1169_v3, %s918_s22  ;;  %v1219_v13 = vld [vmem:[%s1145_s9 + $0x60] sm:$0xff]  ;;  %v1226_v14 = vld [vmem:[%s1145_s9 + $0x78] sm:$0xff]  ;;  %v1319_v34 = vld [vmem:[#allocation7 + $0x10] sm:$0xff]  ;;  %s829_s30 = sshll.u32 %s919_s7, 4  ;;  %s830_s30 = int_to_ptr.vmem [resolvable:$false] %s829_s30 }
  0x72   : > { %v1229_v15 = vld [vmem:[%s1145_s9 + $0x70] sm:$0xff]  ;;  %v1236_v16 = vld [vmem:[%s1145_s9 + $0x88] sm:$0xff]  ;;  %v1239_v17 = vld [vmem:[%s1145_s9 + $0x80] sm:$0xff]  ;;  %p827_p1 = pnand %p826_p8, %p1553_p12  ;;  %s831_s21 = scalar_lea.vmem %s830_s30, 8192 }
  0x73   : > { %v1246_v18 = vld [vmem:[%s1145_s9 + $0x98] sm:$0xff]  ;;  %v1249_v19 = vld [vmem:[%s1145_s9 + $0x90] sm:$0xff]  ;;  %v1256_v20 = vld [vmem:[%s1145_s9 + $0xa8] sm:$0xff]  ;;  %p832_p3 = scmp.lt.s32.totalorder %s1484_s11, %s830_s30  ;;  %p833_p5 = scmp.lt.s32.totalorder %s831_s21, %s825_s10 }
  0x74   : > { %v1259_v21 = vld [vmem:[%s1145_s9 + $0xa0] sm:$0xff]  ;;  %v1266_v22 = vld [vmem:[%s1145_s9 + $0xb8] sm:$0xff]  ;;  %v1269_v23 = vld [vmem:[%s1145_s9 + $0xb0] sm:$0xff]  ;;  %p828_p10 = pneg %p827_p1 }
  0x75   : > { %301 = vrot.lane.b32.xlu1 %v1176_v4, %s918_s22  ;;  %299 = vrot.lane.b32.xlu0 %v1179_v5, %s918_s22  ;;  %v1276_v24 = vld [vmem:[%s1145_s9 + $0xc8] sm:$0xff]  ;;  %v1279_v25 = vld [vmem:[%s1145_s9 + $0xc0] sm:$0xff]  ;;  %v1327_v38 = vld [vmem:[#allocation5 + $0x18] sm:$0xff]  ;;  %p834_p9 = por %p833_p5, %p832_p3 }
  0x76   : > { %v1286_v26 = vld [vmem:[%s1145_s9 + $0xd8] sm:$0xff]  ;;  %v1289_v27 = vld [vmem:[%s1145_s9 + $0xd0] sm:$0xff]  ;;  %v1296_v28 = vld [vmem:[%s1145_s9 + $0xe8] sm:$0xff]  ;;  %v366_v46 = vmul.f32 %v1327_v38, %v1166_v2 }
  0x77   : > { %v1299_v29 = vld [vmem:[%s1145_s9 + $0xe0] sm:$0xff]  ;;  %v1306_v30 = vld [vmem:[%s1145_s9 + $0xf8] sm:$0xff]  ;;  %v1309_v31 = vld [vmem:[%s1145_s9 + $0xf0] sm:$0xff]  ;;  %p835_p11 = pnand %p834_p9, %p828_p10 }
  0x78   : > { %v1317_v33 = vld [vmem:[#allocation5] sm:$0xff]  ;;  %v1329_v39 = vld [vmem:[#allocation5 + $0x8] sm:$0xff]  ;;  %v1333_v44 = vld [vmem:[#allocation7 + $0x18] sm:$0xff] }
  0x79   : > { %305 = vrot.lane.b32.xlu1 %v1186_v6, %s918_s22  ;;  %303 = vrot.lane.b32.xlu0 %v1189_v7, %s918_s22  ;;  %v1321_v35 = vld [vmem:[#allocation7] sm:$0xff]  ;;  %v363_v37 = vmul.f32 %v1317_v33, %v1159_v1  ;;  %v1335_v45 = vld [vmem:[#allocation7 + $0x8] sm:$0xff]  ;;  %v364_v47 = vmul.f32 %v1329_v39, %v1169_v3  ;;  %v1361_v62 = vld [vmem:[#allocation5 + $0x38] sm:$0xff] }
  0x7a   : > { %v1341_v50 = vld [vmem:[#allocation5 + $0x28] sm:$0xff]  ;;  %v1343_v51 = vld [vmem:[#allocation5 + $0x20] sm:$0xff]  ;;  %v1363_v63 = vld [vmem:[#allocation5 + $0x30] sm:$0xff] }
  0x7b   : > { %v1353_v56 = vld [vmem:[#allocation7 + $0x28] sm:$0xff]  ;;  %v1355_v57 = vld [vmem:[#allocation7 + $0x20] sm:$0xff]  ;;  %v368_v58 = vmul.f32 %v1341_v50, %v1176_v4  ;;  %v367_v59 = vmul.f32 %v1343_v51, %v1179_v5  ;;  %v1369_v4 = vld [vmem:[#allocation7 + $0x38] sm:$0xff]  ;;  %v370_v5 = vmul.f32 %v1361_v62, %v1186_v6  ;;  %v371_v6 = vmul.f32 %v1317_v33, %v1199_v9 }
  0x7d   : > { %309 = vrot.lane.b32.xlu1 %v1196_v8, %s918_s22  ;;  %307 = vrot.lane.b32.xlu0 %v1199_v9, %s918_s22 }
  0x81   : > { %313 = vrot.lane.b32.xlu1 %v1206_v10, %s918_s22  ;;  %311 = vrot.lane.b32.xlu0 %v1209_v11, %s918_s22 }
  0x85   : > { %317 = vrot.lane.b32.xlu1 %v1216_v12, %s918_s22  ;;  %315 = vrot.lane.b32.xlu0 %v1219_v13, %s918_s22 }
  0x89   : > { %321 = vrot.lane.b32.xlu1 %v1226_v14, %s918_s22  ;;  %319 = vrot.lane.b32.xlu0 %v1229_v15, %s918_s22 }
  0x8d   : > { %325 = vrot.lane.b32.xlu1 %v1236_v16, %s918_s22  ;;  %323 = vrot.lane.b32.xlu0 %v1239_v17, %s918_s22 }
  0x91   : > { %329 = vrot.lane.b32.xlu1 %v1246_v18, %s918_s22  ;;  %327 = vrot.lane.b32.xlu0 %v1249_v19, %s918_s22 }
  0x95   : > { %333 = vrot.lane.b32.xlu1 %v1256_v20, %s918_s22  ;;  %331 = vrot.lane.b32.xlu0 %v1259_v21, %s918_s22 }
  0x99   : > { %337 = vrot.lane.b32.xlu1 %v1266_v22, %s918_s22  ;;  %335 = vrot.lane.b32.xlu0 %v1269_v23, %s918_s22 }
  0x9d   : > { %341 = vrot.lane.b32.xlu1 %v1276_v24, %s918_s22  ;;  %339 = vrot.lane.b32.xlu0 %v1279_v25, %s918_s22 }
  0xa1   : > { %345 = vrot.lane.b32.xlu1 %v1286_v26, %s918_s22  ;;  %343 = vrot.lane.b32.xlu0 %v1289_v27, %s918_s22 }
  0xa5   : > { %349 = vrot.lane.b32.xlu1 %v1296_v28, %s918_s22  ;;  %347 = vrot.lane.b32.xlu0 %v1299_v29, %s918_s22 }
  0xa9   : > { %353 = vrot.lane.b32.xlu1 %v1306_v30, %s918_s22  ;;  %351 = vrot.lane.b32.xlu0 %v1309_v31, %s918_s22 }
  0xdf   : > { %v296_v40 = vpop.permute.xlu1 %295  ;;  %v292_v41 = vpop.permute.xlu0 %291 }
  0xe0   : > { %v405_v42 = vmul.f32 %v1319_v34, %v296_v40  ;;  %v403_v43 = vmul.f32 %v1321_v35, %v292_v41 }
  0xe2   : > { %v437_v48 = vadd.f32 %v405_v42, %v365_v36  ;;  %v435_v49 = vadd.f32 %v403_v43, %v363_v37  ;;  %v1371_v36 = vld [vmem:[#allocation7 + $0x30] sm:$0xff]  ;;  %v369_v37 = vmul.f32 %v1363_v63, %v1189_v7 }
  0xe3   : > { %v298_v52 = vpop.permute.xlu1 %297  ;;  %v294_v53 = vpop.permute.xlu0 %293 }
  0xe4   : > { %469 = vst [vmem:[%s1347_s20 + $0x10] sm:$0xff] %v437_v48  ;;  %467 = vst [vmem:[%s1347_s20] sm:$0xff] %v435_v49  ;;  %v406_v54 = vmul.f32 %v1333_v44, %v298_v52  ;;  %v404_v55 = vmul.f32 %v1335_v45, %v294_v53  ;;  %v372_v48 = vmul.f32 %v1329_v39, %v1196_v8 }
  0xe5   : > { %v373_v8 = vmul.f32 %v1315_v32, %v1209_v11 }
  0xe6   : > { %v438_v60 = vadd.f32 %v406_v54, %v366_v46  ;;  %v436_v61 = vadd.f32 %v404_v55, %v364_v47 }
  0xe7   : > { %v302_v0 = vpop.permute.xlu1 %301  ;;  %v300_v1 = vpop.permute.xlu0 %299 }
  0xe8   : > { %470 = vst [vmem:[%s1347_s20 + $0x18] sm:$0xff] %v438_v60  ;;  %468 = vst [vmem:[%s1347_s20 + $0x8] sm:$0xff] %v436_v61  ;;  %v408_v2 = vmul.f32 %v1353_v56, %v302_v0  ;;  %v407_v3 = vmul.f32 %v1355_v57, %v300_v1 }
  0xea   : > { %v440_v40 = vadd.f32 %v408_v2, %v368_v58  ;;  %v439_v41 = vadd.f32 %v407_v3, %v367_v59  ;;  %v374_v58 = vmul.f32 %v1327_v38, %v1206_v10  ;;  %v376_v2 = vmul.f32 %v1341_v50, %v1216_v12 }
  0xeb   : > { %v306_v42 = vpop.permute.xlu1 %305  ;;  %v304_v43 = vpop.permute.xlu0 %303  ;;  %v375_v10 = vmul.f32 %v1343_v51, %v1219_v13  ;;  %v377_v12 = vmul.f32 %v1363_v63, %v1229_v15 }
  0xec   : > { %472 = vst [vmem:[%s1347_s20 + $0x28] sm:$0xff] %v440_v40  ;;  %471 = vst [vmem:[%s1347_s20 + $0x20] sm:$0xff] %v439_v41  ;;  %v410_v46 = vmul.f32 %v1369_v4, %v306_v42  ;;  %v409_v47 = vmul.f32 %v1371_v36, %v304_v43  ;;  %v378_v42 = vmul.f32 %v1361_v62, %v1226_v14 }
  0xed   : > { %v379_v14 = vmul.f32 %v1317_v33, %v1239_v17 }
  0xee   : > { %v442_v7 = vadd.f32 %v410_v46, %v370_v5  ;;  %v441_v49 = vadd.f32 %v409_v47, %v369_v37 }
  0xef   : > { %v310_v52 = vpop.permute.xlu1 %309  ;;  %v308_v53 = vpop.permute.xlu0 %307 }
  0xf0   : > { %474 = vst [vmem:[%s1347_s20 + $0x38] sm:$0xff] %v442_v7  ;;  %473 = vst [vmem:[%s1347_s20 + $0x30] sm:$0xff] %v441_v49  ;;  %v412_v54 = vmul.f32 %v1335_v45, %v310_v52  ;;  %v411_v55 = vmul.f32 %v1321_v35, %v308_v53  ;;  %v380_v7 = vmul.f32 %v1329_v39, %v1236_v16 }
  0xf1   : > { %v381_v16 = vmul.f32 %v1315_v32, %v1249_v19 }
  0xf2   : > { %v444_v9 = vadd.f32 %v412_v54, %v372_v48  ;;  %v443_v59 = vadd.f32 %v411_v55, %v371_v6 }
  0xf3   : > { %v314_v60 = vpop.permute.xlu1 %313  ;;  %v312_v61 = vpop.permute.xlu0 %311 }
  0xf4   : > { %476 = vst [vmem:[%s1347_s20 + $0x48] sm:$0xff] %v444_v9  ;;  %475 = vst [vmem:[%s1347_s20 + $0x40] sm:$0xff] %v443_v59  ;;  %v414_v0 = vmul.f32 %v1333_v44, %v314_v60  ;;  %v413_v1 = vmul.f32 %v1319_v34, %v312_v61 }
  0xf6   : > { %v446_v11 = vadd.f32 %v414_v0, %v374_v58  ;;  %v445_v3 = vadd.f32 %v413_v1, %v373_v8  ;;  %v382_v58 = vmul.f32 %v1327_v38, %v1246_v18  ;;  %v384_v0 = vmul.f32 %v1341_v50, %v1256_v20 }
  0xf7   : > { %v318_v5 = vpop.permute.xlu1 %317  ;;  %v316_v37 = vpop.permute.xlu0 %315  ;;  %v383_v18 = vmul.f32 %v1343_v51, %v1259_v21  ;;  %v385_v20 = vmul.f32 %v1363_v63, %v1269_v23 }
  0xf8   : > { %478 = vst [vmem:[%s1347_s20 + $0x58] sm:$0xff] %v446_v11  ;;  %477 = vst [vmem:[%s1347_s20 + $0x50] sm:$0xff] %v445_v3  ;;  %v416_v40 = vmul.f32 %v1353_v56, %v318_v5  ;;  %v415_v41 = vmul.f32 %v1355_v57, %v316_v37  ;;  %v386_v5 = vmul.f32 %v1361_v62, %v1266_v22 }
  0xf9   : > { %v387_v22 = vmul.f32 %v1317_v33, %v1279_v25 }
  0xfa   : > { %v448_v13 = vadd.f32 %v416_v40, %v376_v2  ;;  %v447_v43 = vadd.f32 %v415_v41, %v375_v10 }
  0xfb   : > { %v322_v46 = vpop.permute.xlu1 %321  ;;  %v320_v47 = vpop.permute.xlu0 %319 }
  0xfc   : > { %480 = vst [vmem:[%s1347_s20 + $0x68] sm:$0xff] %v448_v13  ;;  %479 = vst [vmem:[%s1347_s20 + $0x60] sm:$0xff] %v447_v43  ;;  %v418_v48 = vmul.f32 %v1369_v4, %v322_v46  ;;  %v417_v6 = vmul.f32 %v1371_v36, %v320_v47  ;;  %v388_v13 = vmul.f32 %v1329_v39, %v1276_v24 }
  0xfd   : > { %v389_v24 = vmul.f32 %v1315_v32, %v1289_v27 }
  0xfe   : > { %v450_v15 = vadd.f32 %v418_v48, %v378_v42  ;;  %v449_v49 = vadd.f32 %v417_v6, %v377_v12 }
  0xff   : > { %v326_v52 = vpop.permute.xlu1 %325  ;;  %v324_v53 = vpop.permute.xlu0 %323 }
 0x100   : > { %482 = vst [vmem:[%s1347_s20 + $0x78] sm:$0xff] %v450_v15  ;;  %481 = vst [vmem:[%s1347_s20 + $0x70] sm:$0xff] %v449_v49  ;;  %v420_v54 = vmul.f32 %v1335_v45, %v326_v52  ;;  %v419_v55 = vmul.f32 %v1321_v35, %v324_v53 }
 0x102   : > { %v452_v17 = vadd.f32 %v420_v54, %v380_v7  ;;  %v451_v8 = vadd.f32 %v419_v55, %v379_v14  ;;  %v390_v7 = vmul.f32 %v1327_v38, %v1286_v26  ;;  %v392_v26 = vmul.f32 %v1341_v50, %v1296_v28 }
 0x103   : > { %v330_v9 = vpop.permute.xlu1 %329  ;;  %v328_v59 = vpop.permute.xlu0 %327  ;;  %v393_v28 = vmul.f32 %v1363_v63, %v1309_v31 }
 0x104   : > { %484 = vst [vmem:[%s1347_s20 + $0x88] sm:$0xff] %v452_v17  ;;  %483 = vst [vmem:[%s1347_s20 + $0x80] sm:$0xff] %v451_v8  ;;  %v422_v60 = vmul.f32 %v1333_v44, %v330_v9  ;;  %v421_v61 = vmul.f32 %v1319_v34, %v328_v59 }
 0x106   : > { %v454_v19 = vadd.f32 %v422_v60, %v382_v58  ;;  %v453_v1 = vadd.f32 %v421_v61, %v381_v16 }
 0x107   : > { %v334_v2 = vpop.permute.xlu1 %333  ;;  %v332_v10 = vpop.permute.xlu0 %331 }
 0x108   : > { %486 = vst [vmem:[%s1347_s20 + $0x98] sm:$0xff] %v454_v19  ;;  %485 = vst [vmem:[%s1347_s20 + $0x90] sm:$0xff] %v453_v1  ;;  %v424_v11 = vmul.f32 %v1353_v56, %v334_v2  ;;  %v423_v3 = vmul.f32 %v1355_v57, %v332_v10 }
 0x10a   : > { %v456_v21 = vadd.f32 %v424_v11, %v384_v0  ;;  %v455_v37 = vadd.f32 %v423_v3, %v383_v18 }
 0x10b   : > { %v338_v40 = vpop.permute.xlu1 %337  ;;  %v336_v41 = vpop.permute.xlu0 %335 }
 0x10c   : > { %488 = vst [vmem:[%s1347_s20 + $0xa8] sm:$0xff] %v456_v21  ;;  %487 = vst [vmem:[%s1347_s20 + $0xa0] sm:$0xff] %v455_v37  ;;  %v426_v42 = vmul.f32 %v1369_v4, %v338_v40  ;;  %v425_v12 = vmul.f32 %v1371_v36, %v336_v41 }
 0x10e   : > { %v458_v23 = vadd.f32 %v426_v42, %v386_v5  ;;  %v457_v43 = vadd.f32 %v425_v12, %v385_v20 }
 0x10f   : > { %v342_v46 = vpop.permute.xlu1 %341  ;;  %v340_v47 = vpop.permute.xlu0 %339 }
 0x110   : > { %490 = vst [vmem:[%s1347_s20 + $0xb8] sm:$0xff] %v458_v23  ;;  %489 = vst [vmem:[%s1347_s20 + $0xb0] sm:$0xff] %v457_v43  ;;  %v428_v48 = vmul.f32 %v1335_v45, %v342_v46  ;;  %v427_v6 = vmul.f32 %v1321_v35, %v340_v47  ;;  %v391_v35 = vmul.f32 %v1343_v51, %v1299_v29 }
 0x112   : > { %v460_v25 = vadd.f32 %v428_v48, %v388_v13  ;;  %v459_v33 = vadd.f32 %v427_v6, %v387_v22 }
 0x113   : > { %v346_v39 = vpop.permute.xlu1 %345  ;;  %v344_v14 = vpop.permute.xlu0 %343 }
 0x114   : > { %492 = vst [vmem:[%s1347_s20 + $0xc8] sm:$0xff] %v460_v25  ;;  %491 = vst [vmem:[%s1347_s20 + $0xc0] sm:$0xff] %v459_v33  ;;  %v430_v15 = vmul.f32 %v1333_v44, %v346_v39  ;;  %v429_v45 = vmul.f32 %v1319_v34, %v344_v14  ;;  %v394_v34 = vmul.f32 %v1361_v62, %v1306_v30 }
 0x116   : > { %v462_v27 = vadd.f32 %v430_v15, %v390_v7  ;;  %v461_v32 = vadd.f32 %v429_v45, %v389_v24 }
 0x117   : > { %v350_v38 = vpop.permute.xlu1 %349  ;;  %v348_v49 = vpop.permute.xlu0 %347 }
 0x118   : > { %494 = vst [vmem:[%s1347_s20 + $0xd8] sm:$0xff] %v462_v27  ;;  %493 = vst [vmem:[%s1347_s20 + $0xd0] sm:$0xff] %v461_v32  ;;  %v432_v44 = vmul.f32 %v1353_v56, %v350_v38  ;;  %v431_v52 = vmul.f32 %v1355_v57, %v348_v49 }
 0x11a   : > { %v464_v29 = vadd.f32 %v432_v44, %v392_v26  ;;  %v463_v50 = vadd.f32 %v431_v52, %v391_v35 }
 0x11b   : > { %v354_v51 = vpop.permute.xlu1 %353  ;;  %v352_v53 = vpop.permute.xlu0 %351 }
 0x11c   : > { %496 = vst [vmem:[%s1347_s20 + $0xe8] sm:$0xff] %v464_v29  ;;  %495 = vst [vmem:[%s1347_s20 + $0xe0] sm:$0xff] %v463_v50  ;;  %v434_v56 = vmul.f32 %v1369_v4, %v354_v51  ;;  %v433_v57 = vmul.f32 %v1371_v36, %v352_v53 }
 0x11e   : > { %v466_v30 = vadd.f32 %v434_v56, %v394_v34  ;;  %v465_v31 = vadd.f32 %v433_v57, %v393_v28 }
 0x120   : > { %498 = vst [vmem:[%s1347_s20 + $0xf8] sm:$0xff] %v466_v30  ;;  %497 = vst [vmem:[%s1347_s20 + $0xf0] sm:$0xff] %v465_v31 }
 0x121   : > { %838 = shalt.err (!%p835_p11)
}
 0x122   : > { %s839_s28 = scalar_lea.hbm %s1482_s26, 4096  ;;  %s843_s6 = scalar_lea.hbm %s1538_s3, 8192 }
 0x123   : > { %p840_p0 = scmp.ne.s32.totalorder %s1482_s26, %s839_s28  ;;  %p844_p6 = scmp.lt.u32.totalorder %s1482_s26, %s1538_s3 }
 0x124   : > { %p845_p7 = scmp.lt.u32.totalorder %s843_s6, %s839_s28  ;;  %p847_p8 = scmp.lt.u32.totalorder %s839_s28, %s1482_s26 }
 0x125   : > { %p841_p4 = pnand %p840_p0, %p1553_p12 }
 0x126   : > { %p846_p2 = por %p845_p7, %p844_p6 }
 0x127   : > { %p842_p13 = pneg %p841_p4 }
 0x128   : > { %p848_p1 = por %p847_p8, %p846_p2 }
 0x12a   : > { %p849_p10 = pnand %p848_p1, %p842_p13 }
 0x12c   : > { %852 = shalt.err (!%p849_p10)
}
 0x12d   : > { %s920_s20 = smov 128   ;;  %s921_s24 = smov 8  }
 0x12e   : > { %661 = dma.vmem_to_hbm [thread:$0]  (%p1553_p12), %s1484_s11, 4096, %s1482_s26, %s500_s15, %s920_s20, %s920_s20, %s921_s24  }
 0x12f PF: > { %s531_s18 = sand.u32 1, %s891_s12   ;;  %p1554_p3 = scmp.ne.s32.totalorder %s1546_s23, 0 }
 0x130   : > { %p1555_p5 = scmp.ge.s32.totalorder %s911_s17, 2  ;;  %s532_s8 = scalar_lea.sflag [#allocation4], %s531_s18 }
 0x132   : > { %p675_p9 = pnand %p1555_p5, %p1554_p3 }
 0x134   : > { %886 = dma.done.wait (!%p675_p9), %s532_s8, 4096  }
 0x135   : > { %888 = vsyncadd (!%p675_p9), %s532_s8, 4294963200  ;;  %s20_s17 = sadd.s32 1, %s911_s17   ;;  %s1556_s12 = smov %s895_s13 }
 0x136   : > { %p17_p11 = scmp.ge.s32.totalorder %s20_s17, 4   ;;  %s1557_s13 = smov %s899_s14 }
 0x137   : > { %s1558_s14 = smov %s1090_s5  ;;  %s1559_s15 = smov %s907_s16 }
 0x138   : > { %s1560_s16 = smov %s1562_s27  ;;  %19 = sbr.rel (!%p17_p11) target bundleno = 7 (0x7), region = 87 }
 0x13f   :  { %537 = vsyncpa [#allocation3], 1 }
 0x140   :  { %539 = vsyncpa [#allocation3 + $0x1], 1 }
 0x141   :  { %540 = vsyncpa [#allocation6], 1 }
 0x142   :  { %541 = vsyncpa [#allocation4], 1 }
 0x143   :  { %543 = vsyncpa [#allocation4 + $0x1], 1 }

</bundles_post_ra>
